<compile_context>
chip_gen: v6e
topology: v6e:2x2x1
jax: 0.10.0
libtpu: 0.0.40
codegen_flags: <defaults>
</compile_context>

<pallas_src>
import functools

import numpy as np
import jax
import jax.numpy as jnp
from jax import lax
from jax.experimental import pallas as pl
from jax.experimental.pallas import tpu as pltpu


def _round_up(x, m):
    return ((x + m - 1) // m) * m


# ----------------------------------------------------------------------------
# Pallas kernel: one lane-dense MXU matmul over the folded-tap contraction
# (K = T*Cin) + mask-ratio epilogue (+ optional residual add / ReLU).
# BatchNorm (eval) scale is pre-folded into weights/bias on the host; only the
# shift survives as an epilogue add.
# ----------------------------------------------------------------------------
def _pconv_kernel(*refs, slide, apply_relu, has_residual):
    if has_residual:
        xs_ref, mt_ref, w_ref, b_ref, sh_ref, res_ref, out_ref, upd_ref = refs
    else:
        xs_ref, mt_ref, w_ref, b_ref, sh_ref, out_ref, upd_ref = refs
        res_ref = None

    # Single matmul: (tm, T*Cin) x (T*Cin, Cout) -> f32 accumulator.
    acc = jnp.dot(xs_ref[...], w_ref[...], preferred_element_type=jnp.float32)

    # One cross-lane reduction over the (already channel-summed) mask taps.
    msum = jnp.sum(mt_ref[...], axis=-1, keepdims=True)            # (tm, 1)
    update = jnp.clip(msum, 0.0, 1.0)
    ratio = (slide / (msum + 1e-8)) * update                       # (tm, 1); trivial epilogue cost

    # Canonical PartialConv2d bias handling: (conv_nobias * ratio + b) * update.
    out = (acc * ratio + b_ref[...]) * update
    out = out + sh_ref[...]                                        # BN shift (zeros when unused)
    if res_ref is not None:
        out = out + res_ref[...]
    if apply_relu:
        out = jnp.maximum(out, 0.0)

    out_ref[...] = out
    upd_ref[...] = update                                          # (tm, 1) — broadcast outside


def _extract_taps(a, K, pad):
    """im2col: (N,H,W,C) -> (N*H*W, K*K*C); tap order (ky, kx, c) matches OIHW->(ky,kx,ci,co)."""
    N, H, W, C = a.shape
    if K == 1:
        return a.reshape(N * H * W, C)
    ap = jnp.pad(a, ((0, 0), (pad, pad), (pad, pad), (0, 0)))
    taps = [ap[:, ky:ky + H, kx:kx + W, :] for ky in range(K) for kx in range(K)]
    return jnp.concatenate(taps, axis=-1).reshape(N * H * W, K * K * C)


def pconv2d_pallas(x, mask, w, b, K, pad, scale=None, shift=None, residual=None,
                   apply_relu=False, tm=512):
    """Partial conv (stride 1). x, mask: NHWC float32. w: (Cout, Cin, K, K)."""
    N, H, W, Cin = x.shape
    Cout = w.shape[0]
    T = K * K
    TC = T * Cin
    M = N * H * W
    slide = float(TC)

    x = x.astype(jnp.float32)
    mask = mask.astype(jnp.float32)

    # Fold BatchNorm(eval) scale into weights/bias host-side.
    w_f = w.astype(jnp.float32)
    b_f = b.astype(jnp.float32)
    if scale is not None:
        s = scale.astype(jnp.float32).reshape(Cout)
        w_f = w_f * s[:, None, None, None]
        b_f = b_f * s
    sh = (jnp.zeros((1, Cout), jnp.float32) if shift is None
          else shift.astype(jnp.float32).reshape(1, Cout))

    # Pre-mask the input and collapse the mask to a single channel-sum plane.
    xm = x * mask
    mpix = jnp.sum(mask, axis=-1, keepdims=True)        # (N, H, W, 1)

    xs = _extract_taps(xm, K, pad)                      # (M, T*Cin)
    mt = _extract_taps(mpix, K, pad)                    # (M, T)

    # Taps folded along the contraction axis.
    w_r = jnp.transpose(w_f, (2, 3, 1, 0)).reshape(TC, Cout)
    b_r = b_f.reshape(1, Cout)

    has_res = residual is not None
    if has_res:
        res = residual.astype(jnp.float32).reshape(M, Cout)

    # Tile the flattened spatial dim; keep >= 2 grid steps (v7x has 2 TensorCores) and pad
    # M so the grid divides evenly (no hard asserts; tm is freely tunable per generation).
    tm_eff = max(8, min(int(tm), _round_up(-(-M // 2), 8)))
    Mp = _round_up(M, tm_eff)
    if Mp != M:
        pr = Mp - M
        xs = jnp.pad(xs, ((0, pr), (0, 0)))
        mt = jnp.pad(mt, ((0, pr), (0, 0)))
        if has_res:
            res = jnp.pad(res, ((0, pr), (0, 0)))
    grid = Mp // tm_eff

    # VMEM budget: double-buffered (8,128)-padded blocks + headroom, clamped so it is safe
    # on v5e/v6e (128 MiB physical) and v7x (64 MiB physical).
    lane = lambda c: _round_up(c, 128)
    per_step = 4 * tm_eff * (lane(TC) + lane(T) + lane(Cout) + lane(1)
                             + (lane(Cout) if has_res else 0))
    vmem_limit = int(min(max(2 * per_step + (8 << 20), 16 << 20), 48 << 20))

    # NOTE: the output last dim is the true Cout (lane-sparse at these toy channel counts).
    # Padding Cout to 128 would make stores unmasked but multiplies HBM writeback by
    # 128/Cout on this mem-bound kernel; production Cout >= 128 is lane-dense for free.
    in_specs = [
        pl.BlockSpec((tm_eff, TC), lambda i: (i, 0)),      # taps of x*mask
        pl.BlockSpec((tm_eff, T), lambda i: (i, 0)),       # taps of per-pixel mask sum
        pl.BlockSpec((TC, Cout), lambda i: (0, 0)),        # folded weights (resident)
        pl.BlockSpec((1, Cout), lambda i: (0, 0)),         # bias (BN scale folded in)
        pl.BlockSpec((1, Cout), lambda i: (0, 0)),         # BN shift
    ]
    args = [xs, mt, w_r, b_r, sh]
    if has_res:
        in_specs.append(pl.BlockSpec((tm_eff, Cout), lambda i: (i, 0)))
        args.append(res)

    kernel = functools.partial(_pconv_kernel, slide=slide, apply_relu=apply_relu,
                               has_residual=has_res)
    out, upd = pl.pallas_call(
        kernel,
        out_shape=(jax.ShapeDtypeStruct((Mp, Cout), jnp.float32),
                   jax.ShapeDtypeStruct((Mp, 1), jnp.float32)),
        grid=(grid,),
        in_specs=in_specs,
        out_specs=(pl.BlockSpec((tm_eff, Cout), lambda i: (i, 0)),
                   pl.BlockSpec((tm_eff, 1), lambda i: (i, 0))),
        compiler_params=pltpu.CompilerParams(
            dimension_semantics=("parallel",),
            vmem_limit_bytes=vmem_limit),
    )(*args)

    out = out[:M].reshape(N, H, W, Cout)
    upd = upd[:M].reshape(N, H, W, 1)
    # All Cout mask channels are identical -> broadcast lazily outside the kernel.
    new_mask = jnp.broadcast_to(upd, (N, H, W, Cout))
    return out, new_mask


# ----------------------------------------------------------------------------
# Pure-JAX reference (lax.conv) for correctness checking.
# ----------------------------------------------------------------------------
def pconv2d_ref(x, mask, w, b, K, pad, scale=None, shift=None, residual=None,
                apply_relu=False):
    Cin, Cout = x.shape[-1], w.shape[0]
    dn = lax.conv_dimension_numbers(x.shape, w.shape, ('NHWC', 'OIHW', 'NHWC'))
    hi = jax.lax.Precision.HIGHEST
    raw = lax.conv_general_dilated(x * mask, w, (1, 1), [(pad, pad), (pad, pad)],
                                   dimension_numbers=dn, precision=hi)
    msum = lax.conv_general_dilated(mask, jnp.ones_like(w), (1, 1),
                                    [(pad, pad), (pad, pad)],
                                    dimension_numbers=dn, precision=hi)
    slide = float(K * K * Cin)
    update = jnp.clip(msum, 0.0, 1.0)
    ratio = slide / (msum + 1e-8) * update
    out = (raw * ratio + b.reshape(1, 1, 1, Cout)) * update
    if scale is not None:
        out = out * scale.reshape(1, 1, 1, Cout)
    if shift is not None:
        out = out + shift.reshape(1, 1, 1, Cout)
    if residual is not None:
        out = out + residual
    if apply_relu:
        out = jnp.maximum(out, 0.0)
    return out, update


# ----------------------------------------------------------------------------
# Bilinear 2x upsample, PyTorch nn.Upsample(mode='bilinear', align_corners=False)
# ----------------------------------------------------------------------------
def upsample2x_bilinear(a):  # NHWC
    def up1(t, axis):
        S = t.shape[axis]
        o = jnp.arange(2 * S, dtype=jnp.float32)
        src = jnp.maximum((o + 0.5) / 2.0 - 0.5, 0.0)
        i0 = jnp.floor(src).astype(jnp.int32)
        i1 = jnp.minimum(i0 + 1, S - 1)
        lam = src - i0.astype(jnp.float32)
        t0 = jnp.take(t, i0, axis=axis)
        t1 = jnp.take(t, i1, axis=axis)
        shp = [1] * t.ndim
        shp[axis] = 2 * S
        lam = lam.reshape(shp)
        return t0 * (1.0 - lam) + t1 * lam
    return up1(up1(a, 1), 2)


# ----------------------------------------------------------------------------
# UpPConvD forward (orchestration); pconv_fn is either the Pallas or ref impl.
# ----------------------------------------------------------------------------
def up_pconvd_forward(params, x_nchw, mask_nchw, from_down_nchw, from_down_mask_nchw,
                      pconv_fn):
    to_nhwc = lambda a: jnp.transpose(a, (0, 2, 3, 1))
    to_nchw = lambda a: jnp.transpose(a, (0, 3, 1, 2))
    x, mask = to_nhwc(x_nchw), to_nhwc(mask_nchw)
    fd, fdm = to_nhwc(from_down_nchw), to_nhwc(from_down_mask_nchw)

    x, mask = upsample2x_bilinear(x), upsample2x_bilinear(mask)
    x, mask_in = pconv_fn(x, mask, params["up_w"], params["up_b"], 1, 0)          # pconv1x1
    x1 = jnp.concatenate([x, fd], axis=-1)                                        # concat=True
    mask_in = jnp.concatenate([mask_in, fdm], axis=-1)
    x1, mask_in = pconv_fn(x1, mask_in, params["c1_w"], params["c1_b"], 3, 1,
                           apply_relu=True)                                       # conv1 + relu
    x2 = x1
    for blk in params["blocks"]:                                                  # PConvLayer stack
        x2, mask_in = pconv_fn(x1, mask_in, blk["w"], blk["b"], 3, 1,
                               scale=blk["bn_scale"], shift=blk["bn_shift"],
                               residual=x1, apply_relu=True)
        x1 = x2
    return to_nchw(x2), to_nchw(mask_in)


# ----------------------------------------------------------------------------
# Deterministic parameter init (shapes match the PyTorch module __init__).
# ----------------------------------------------------------------------------
def _init_conv(key, cout, cin, k):
    wk, bk = jax.random.split(key)
    bound = 1.0 / np.sqrt(cin * k * k)
    w = jax.random.uniform(wk, (cout, cin, k, k), jnp.float32, -bound, bound)
    b = jax.random.uniform(bk, (cout,), jnp.float32, -bound, bound)
    return w, b


def init_up_pconvd(key, in_ch, out_ch, blocks, norm=True):
    ks = jax.random.split(key, 2 + blocks)
    up_w, up_b = _init_conv(ks[0], out_ch, in_ch, 1)
    c1_w, c1_b = _init_conv(ks[1], out_ch, 2 * out_ch, 3)
    blks = []
    eps = 1e-5
    for i in range(blocks):
        w, b = _init_conv(ks[2 + i], out_ch, out_ch, 3)
        # BatchNorm2d in eval mode: gamma=1, beta=0, running_mean=0, running_var=1
        scale = (jnp.full((out_ch,), 1.0 / np.sqrt(1.0 + eps), jnp.float32)
                 if norm else jnp.ones((out_ch,), jnp.float32))
        shift = jnp.zeros((out_ch,), jnp.float32)
        blks.append(dict(w=w, b=b, bn_scale=scale, bn_shift=shift))
    return dict(up_w=up_w, up_b=up_b, c1_w=c1_w, c1_b=c1_b, blocks=blks)


if __name__ == "__main__":
    key = jax.random.PRNGKey(0)
    N, in_ch, out_ch, H, W, blocks = 2, 8, 8, 8, 8, 2
    k = jax.random.split(key, 5)

    x = jax.random.normal(k[0], (N, in_ch, H, W), jnp.float32)
    mask = (jax.random.uniform(k[1], (N, in_ch, H, W)) > 0.3).astype(jnp.float32)
    from_down = jax.random.normal(k[2], (N, out_ch, 2 * H, 2 * W), jnp.float32)
    from_down_mask = (jax.random.uniform(k[3], (N, out_ch, 2 * H, 2 * W)) > 0.3
                      ).astype(jnp.float32)
    params = init_up_pconvd(k[4], in_ch, out_ch, blocks)

    out, out_mask = up_pconvd_forward(params, x, mask, from_down, from_down_mask,
                                      pconv2d_pallas)
    jax.block_until_ready((out, out_mask))

    ref_out, ref_mask = up_pconvd_forward(params, x, mask, from_down, from_down_mask,
                                          pconv2d_ref)
    np.testing.assert_allclose(np.asarray(out), np.asarray(ref_out),
                               rtol=2e-3, atol=2e-3)
    np.testing.assert_allclose(np.asarray(out_mask), np.asarray(ref_mask),
                               rtol=1e-5, atol=1e-5)

    assert out.shape == (N, out_ch, 2 * H, 2 * W)
    assert out_mask.shape == (N, out_ch, 2 * H, 2 * W)
    print("KERNEL_OK")
</pallas_src>

<mosaic_0001>
module attributes {stable_mosaic.version = 11 : i64} {
  func.func @_pconv_kernel(%arg0: i32, %arg1: memref<256x8xf32, #tpu.memory_space<vmem>>, %arg2: memref<256x1xf32, #tpu.memory_space<vmem>>, %arg3: memref<8x8xf32, #tpu.memory_space<vmem>>, %arg4: memref<1x8xf32, #tpu.memory_space<vmem>>, %arg5: memref<1x8xf32, #tpu.memory_space<vmem>>, %arg6: memref<256x8xf32, #tpu.memory_space<vmem>>, %arg7: memref<256x1xf32, #tpu.memory_space<vmem>>) attributes {dimension_semantics = [#tpu.dimension_semantics<parallel>], iteration_bounds = array<i64: 2>, scalar_prefetch = 0 : i64, scratch_operands = 0 : i64, tpu.core_type = #tpu.core_type<tc>, window_params = [{transform_indices = @transform_0, window_bounds = array<i64: 256, 8>}, {transform_indices = @transform_1, window_bounds = array<i64: 256, 1>}, {pipeline_mode = #tpu.pipeline_mode<synchronous>, transform_indices = @transform_2, window_bounds = array<i64: 8, 8>}, {pipeline_mode = #tpu.pipeline_mode<synchronous>, transform_indices = @transform_3, window_bounds = array<i64: 1, 8>}, {pipeline_mode = #tpu.pipeline_mode<synchronous>, transform_indices = @transform_4, window_bounds = array<i64: 1, 8>}, {transform_indices = @transform_5, window_bounds = array<i64: 256, 8>}, {transform_indices = @transform_6, window_bounds = array<i64: 256, 1>}]} {
    %c0 = arith.constant 0 : index
    %c0_0 = arith.constant 0 : index
    %0 = vector.load %arg1[%c0, %c0_0] : memref<256x8xf32, #tpu.memory_space<vmem>>, vector<256x8xf32>
    %c0_1 = arith.constant 0 : index
    %c0_2 = arith.constant 0 : index
    %1 = vector.load %arg3[%c0_1, %c0_2] : memref<8x8xf32, #tpu.memory_space<vmem>>, vector<8x8xf32>
    %cst = arith.constant dense<0.000000e+00> : vector<256x8xf32>
    %2 = tpu.matmul %0, %1, %cst {dimension_numbers = #tpu.dot_dimension_numbers<[1], [0], [0], [1], [0, 0, 1, 1], [], []>} : vector<256x8xf32>, vector<8x8xf32>, vector<256x8xf32> -> vector<256x8xf32>
    %c0_3 = arith.constant 0 : index
    %c0_4 = arith.constant 0 : index
    %3 = vector.load %arg2[%c0_3, %c0_4] : memref<256x1xf32, #tpu.memory_space<vmem>>, vector<256x1xf32>
    %cst_5 = arith.constant dense<0.000000e+00> : vector<256xf32>
    %4 = vector.multi_reduction <add>, %3, %cst_5 [1] : vector<256x1xf32> to vector<256xf32>
    %5 = vector.shape_cast %4 : vector<256xf32> to vector<256x1xf32>
    %cst_6 = arith.constant 0.000000e+00 : f32
    %cst_7 = arith.constant 1.000000e+00 : f32
    %6 = vector.broadcast %cst_6 : f32 to vector<256x1xf32>
    %7 = arith.maximumf %6, %5 : vector<256x1xf32>
    %8 = vector.broadcast %cst_7 : f32 to vector<256x1xf32>
    %9 = arith.minimumf %8, %7 : vector<256x1xf32>
    %cst_8 = arith.constant 9.99999993E-9 : f32
    %10 = vector.broadcast %cst_8 : f32 to vector<256x1xf32>
    %11 = arith.addf %5, %10 : vector<256x1xf32>
    %cst_9 = arith.constant 8.000000e+00 : f32
    %12 = vector.broadcast %cst_9 : f32 to vector<256x1xf32>
    %13 = arith.divf %12, %11 : vector<256x1xf32>
    %14 = arith.mulf %13, %9 : vector<256x1xf32>
    %15 = vector.broadcast %14 : vector<256x1xf32> to vector<256x8xf32>
    %16 = arith.mulf %2, %15 : vector<256x8xf32>
    %c0_10 = arith.constant 0 : index
    %c0_11 = arith.constant 0 : index
    %17 = vector.load %arg4[%c0_10, %c0_11] : memref<1x8xf32, #tpu.memory_space<vmem>>, vector<1x8xf32>
    %18 = vector.broadcast %17 : vector<1x8xf32> to vector<256x8xf32>
    %19 = arith.addf %16, %18 : vector<256x8xf32>
    %20 = vector.broadcast %9 : vector<256x1xf32> to vector<256x8xf32>
    %21 = arith.mulf %19, %20 : vector<256x8xf32>
    %c0_12 = arith.constant 0 : index
    %c0_13 = arith.constant 0 : index
    %22 = vector.load %arg5[%c0_12, %c0_13] : memref<1x8xf32, #tpu.memory_space<vmem>>, vector<1x8xf32>
    %23 = vector.broadcast %22 : vector<1x8xf32> to vector<256x8xf32>
    %24 = arith.addf %21, %23 : vector<256x8xf32>
    %c0_14 = arith.constant 0 : index
    %c0_15 = arith.constant 0 : index
    %25 = vector.load %arg6[%c0_14, %c0_15] : memref<256x8xf32, #tpu.memory_space<vmem>>, vector<256x8xf32>
    tpu.vector_store %arg6[%c0_14, %c0_15], %24 {strides = array<i32>} : memref<256x8xf32, #tpu.memory_space<vmem>>, vector<256x8xf32>,
    %c0_16 = arith.constant 0 : index
    %c0_17 = arith.constant 0 : index
    %26 = vector.load %arg7[%c0_16, %c0_17] : memref<256x1xf32, #tpu.memory_space<vmem>>, vector<256x1xf32>
    tpu.vector_store %arg7[%c0_16, %c0_17], %9 {strides = array<i32>} : memref<256x1xf32, #tpu.memory_space<vmem>>, vector<256x1xf32>,
    return
  }
  func.func @transform_0(%arg0: i32) -> (i32, i32) {
    %c0_i32 = arith.constant 0 : i32
    %c0_i32_0 = arith.constant 0 : i32
    return %arg0, %c0_i32 : i32, i32
  }
  func.func @transform_1(%arg0: i32) -> (i32, i32) {
    %c0_i32 = arith.constant 0 : i32
    %c0_i32_0 = arith.constant 0 : i32
    return %arg0, %c0_i32 : i32, i32
  }
  func.func @transform_2(%arg0: i32) -> (i32, i32) {
    %c0_i32 = arith.constant 0 : i32
    %c0_i32_0 = arith.constant 0 : i32
    %c0_i32_1 = arith.constant 0 : i32
    return %c0_i32, %c0_i32_0 : i32, i32
  }
  func.func @transform_3(%arg0: i32) -> (i32, i32) {
    %c0_i32 = arith.constant 0 : i32
    %c0_i32_0 = arith.constant 0 : i32
    %c0_i32_1 = arith.constant 0 : i32
    return %c0_i32, %c0_i32_0 : i32, i32
  }
  func.func @transform_4(%arg0: i32) -> (i32, i32) {
    %c0_i32 = arith.constant 0 : i32
    %c0_i32_0 = arith.constant 0 : i32
    %c0_i32_1 = arith.constant 0 : i32
    return %c0_i32, %c0_i32_0 : i32, i32
  }
  func.func @transform_5(%arg0: i32) -> (i32, i32) {
    %c0_i32 = arith.constant 0 : i32
    %c0_i32_0 = arith.constant 0 : i32
    return %arg0, %c0_i32 : i32, i32
  }
  func.func @transform_6(%arg0: i32) -> (i32, i32) {
    %c0_i32 = arith.constant 0 : i32
    %c0_i32_0 = arith.constant 0 : i32
    return %arg0, %c0_i32 : i32, i32
  }
}

</mosaic_0001>

<bundles_post_ra>
// kernel: tpu_custom_call.1
= control target key start
LH: loop header
LB: loop body
LE: loop exit
PB: predicated region body
PF: predicated region fallthrough
CT: control target
= control target key end

     0   :  { %s1784_s21 = smov 0   ;;  %s2384_s0 = inlined_call_operand.vmem [shape: f32[512,8], index: 0, kind: input, shape index: {}]   ;;  %s2385_s1 = inlined_call_operand.vmem [shape: f32[512,1], index: 1, kind: input, shape index: {}]   ;;  %s2386_s2 = inlined_call_operand.vmem [shape: f32[8,8], index: 2, kind: input, shape index: {}]   ;;  %s2387_s3 = inlined_call_operand.vmem [shape: f32[1,8], index: 3, kind: input, shape index: {}]   ;;  %s2388_s4 = inlined_call_operand.vmem [shape: f32[1,8], index: 4, kind: input, shape index: {}]   ;;  %s2389_s5 = inlined_call_operand.vmem [shape: f32[512,8], index: 5, kind: output, shape index: {0}]   ;;  %s2390_s6 = inlined_call_operand.vmem [shape: f32[512,1], index: 6, kind: output, shape index: {1}]  }
   0x1 LB: > { %s1531_s22 = sadd.s32 4294967295, %s1746_s21   ;;  %p1535_p0 = scmp.ge.s32.totalorder %s1746_s21, 1  ;;  %s1746_s21 = sphi %s1784_s21, %s17_s21  }
   0x2   : > { %p227_p1 = scmp.lt.s32.totalorder %s1746_s21, 3 }
   0x4   : > { %p228_p2 = pnand %p1535_p0, %p227_p1 }
   0x5   : > { %s1536_s25 = sshll.u32 (!%p228_p2), %s1531_s22, 5 }
   0x6   : > { %231 = sbr.rel (%p228_p2) target bundleno = 292 (0x124), region = 40  ;;  %p268_p3 = scmp.lt.s32.totalorder (!%p228_p2), %s1536_s25, 63 }
   0xb   : > { %v323_v0 = vld [vmem:[%s2386_s2] sm:$0xff]  ;;  %s2392_s25 = smov (!%p268_p3, %s1536_s25), 63  ;;  %v1748_v1 = vmov 0   ;;  %vm324_vm0 = vcmask 64512   ;;  %vm1396_vm1 = vcmask 7168  }
   0xc   : > { %1613 = vmatprep.subr.mxu0 %v323_v0  ;;  %1663 = vmatprep.subr.mxu1 %v323_v0  ;;  %s1795_s26 = sshll.u32 %s2392_s25, 3 }
   0xd   : > { %1614 = vmatpush3.msra.mxu0 %v323_v0  ;;  %1664 = vmatpush3.msra.mxu1 %v323_v0  ;;  %s1801_s29 = scalar_lea.vmem %s2384_s0, %s1795_s26  ;;  %s1821_s8 = scalar_lea.vmem %s2385_s1, %s1795_s26 }
   0xe   : > { %1675 = vset.pattern.permute.xlu1 %v1748_v1  ;;  %1674 = vset.pattern.permute.xlu0 %v1748_v1  ;;  %v291_v2 = vld [vmem:[%s1801_s29] sm:$0xff]  ;;  %v292_v4 = vld [vmem:[%s1801_s29 + $0x8] sm:$0xff]  ;;  %v293_v6 = vld [vmem:[%s1801_s29 + $0x10] sm:$0xff]  ;;  %s1837_s11 = scalar_lea.vmem %s2390_s6, %s1795_s26  ;;  %s2209_s18 = scalar_lea.vmem %s2389_s5, %s1795_s26 }
   0xf   : > { %v307_v3 = vld [vmem:[%s1801_s29 + $0x80] sm:$0xff]  ;;  %1615 = vmatprep.mubr.msk.f32.mxu0 %vm324_vm0, %v291_v2  ;;  %v308_v5 = vld [vmem:[%s1801_s29 + $0x88] sm:$0xff]  ;;  %v309_v7 = vld [vmem:[%s1801_s29 + $0x90] sm:$0xff] }
  0x10   : > { %1639 = vmatprep.mubr.msk.f32.mxu1 %vm324_vm0, %v307_v3  ;;  %1616 = vmatmul.mubr.msk.f32.vlgmr.msra.gmra.mxu0 %vm324_vm0, %v292_v4  ;;  %v294_v8 = vld [vmem:[%s1801_s29 + $0x18] sm:$0xff]  ;;  %v295_v10 = vld [vmem:[%s1801_s29 + $0x20] sm:$0xff]  ;;  %v648_v12 = vld [vmem:[%s1821_s8 + $0x10] sm:$0xff] }
  0x11   : > { %1640 = vmatmul.mubr.msk.f32.vlgmr.msra.gmra.mxu1 %vm324_vm0, %v308_v5  ;;  %1618 = vmatprep.mubr.msk.f32.mxu0 %vm324_vm0, %v293_v6  ;;  %v310_v9 = vld [vmem:[%s1801_s29 + $0x98] sm:$0xff]  ;;  %v311_v11 = vld [vmem:[%s1801_s29 + $0xa0] sm:$0xff]  ;;  %v296_v13 = vld [vmem:[%s1801_s29 + $0x28] sm:$0xff]  ;;  %v712_v15 = vmax.f32 %v648_v12, 0.0  ;;  %v776_v16 = vadd.f32 1e-08, %v648_v12 }
  0x12   : > { %1642 = vmatprep.mubr.msk.f32.mxu1 %vm324_vm0, %v309_v7  ;;  %v312_v14 = vld [vmem:[%s1801_s29 + $0xa8] sm:$0xff]  ;;  %v646_v17 = vld [vmem:[%s1821_s8] sm:$0xff]  ;;  %v297_v18 = vld [vmem:[%s1801_s29 + $0x30] sm:$0xff] }
  0x13   : > { %v313_v19 = vld [vmem:[%s1801_s29 + $0xb0] sm:$0xff]  ;;  %v710_v20 = vmax.f32 %v646_v17, 0.0  ;;  %v774_v21 = vadd.f32 1e-08, %v646_v17  ;;  %v649_v22 = vld [vmem:[%s1821_s8 + $0x18] sm:$0xff]  ;;  %v1842_v23 = vmin.f32 %v712_v15, 1.0  ;;  %1676 = vrcp.f32 %v776_v16 }
  0x14   : > { %1619 = vmatmul.mubr.msk.f32.gmra.mxu0 %vm324_vm0, %v294_v8  ;;  %v713_v24 = vmax.f32 %v649_v22, 0.0  ;;  %v777_v25 = vadd.f32 1e-08, %v649_v22  ;;  %v647_v26 = vld [vmem:[%s1821_s8 + $0x8] sm:$0xff]  ;;  %v298_v27 = vld [vmem:[%s1801_s29 + $0x38] sm:$0xff]  ;;  %v650_v34 = vld [vmem:[%s1821_s8 + $0x20] sm:$0xff] }
  0x15   : > { %1643 = vmatmul.mubr.msk.f32.gmra.mxu1 %vm324_vm0, %v310_v9  ;;  %1621 = vmatprep.mubr.msk.f32.mxu0 %vm324_vm0, %v295_v10  ;;  %v1848_v28 = vmin.f32 %v710_v20, 1.0  ;;  %1678 = vrcp.f32 %v774_v21  ;;  %v711_v29 = vmax.f32 %v647_v26, 0.0  ;;  %v775_v30 = vadd.f32 1e-08, %v647_v26  ;;  %v314_v31 = vld [vmem:[%s1801_s29 + $0xb8] sm:$0xff]  ;;  %1399 = vst.msk [vmem:[%s1837_s11 + $0x10] sm:$0xff] %vm1396_vm1, %v1842_v23 }
  0x16   : > { %1645 = vmatprep.mubr.msk.f32.mxu1 %vm324_vm0, %v311_v11  ;;  %v1856_v32 = vmin.f32 %v713_v24, 1.0  ;;  %1680 = vrcp.f32 %v777_v25  ;;  %v651_v33 = vld [vmem:[%s1821_s8 + $0x28] sm:$0xff]  ;;  %v299_v35 = vld [vmem:[%s1801_s29 + $0x40] sm:$0xff]  ;;  %v714_v42 = vmax.f32 %v650_v34, 0.0  ;;  %v778_v43 = vadd.f32 1e-08, %v650_v34 }
  0x17   : > { %v315_v36 = vld [vmem:[%s1801_s29 + $0xc0] sm:$0xff]  ;;  %1397 = vst.msk [vmem:[%s1837_s11] sm:$0xff] %vm1396_vm1, %v1848_v28  ;;  %v1865_v37 = vmin.f32 %v711_v29, 1.0  ;;  %1682 = vrcp.f32 %v775_v30  ;;  %v715_v38 = vmax.f32 %v651_v33, 0.0  ;;  %v779_v39 = vadd.f32 1e-08, %v651_v33 }
  0x18   : > { %1622 = vmatmul.mubr.msk.f32.gmra.mxu0 %vm324_vm0, %v296_v13  ;;  %v300_v40 = vld [vmem:[%s1801_s29 + $0x48] sm:$0xff]  ;;  %1400 = vst.msk [vmem:[%s1837_s11 + $0x18] sm:$0xff] %vm1396_vm1, %v1856_v32  ;;  %v653_v44 = vld [vmem:[%s1821_s8 + $0x38] sm:$0xff]  ;;  %v301_v45 = vld [vmem:[%s1801_s29 + $0x50] sm:$0xff]  ;;  %v1885_v51 = vmin.f32 %v714_v42, 1.0 }
  0x19   : > { %1646 = vmatmul.mubr.msk.f32.gmra.mxu1 %vm324_vm0, %v312_v14  ;;  %1624 = vmatprep.mubr.msk.f32.mxu0 %vm324_vm0, %v297_v18  ;;  %v316_v41 = vld [vmem:[%s1801_s29 + $0xc8] sm:$0xff]  ;;  %1398 = vst.msk [vmem:[%s1837_s11 + $0x8] sm:$0xff] %vm1396_vm1, %v1865_v37  ;;  %v1879_v46 = vmin.f32 %v715_v38, 1.0  ;;  %1684 = vrcp.f32 %v779_v39  ;;  %v717_v47 = vmax.f32 %v653_v44, 0.0  ;;  %v781_v48 = vadd.f32 1e-08, %v653_v44 }
  0x1a   : > { %1648 = vmatprep.mubr.msk.f32.mxu1 %vm324_vm0, %v313_v19  ;;  %v652_v49 = vld [vmem:[%s1821_s8 + $0x30] sm:$0xff]  ;;  %v655_v50 = vld [vmem:[%s1821_s8 + $0x48] sm:$0xff]  ;;  %1686 = vrcp.f32 %v778_v43  ;;  %v654_v54 = vld [vmem:[%s1821_s8 + $0x40] sm:$0xff]  ;;  %1401 = vst.msk [vmem:[%s1837_s11 + $0x20] sm:$0xff] %vm1396_vm1, %v1885_v51 }
  0x1b   : > { %v716_v52 = vmax.f32 %v652_v49, 0.0  ;;  %v780_v53 = vadd.f32 1e-08, %v652_v49  ;;  %v657_v55 = vld [vmem:[%s1821_s8 + $0x58] sm:$0xff]  ;;  %v317_v56 = vld [vmem:[%s1801_s29 + $0xd0] sm:$0xff]  ;;  %1402 = vst.msk [vmem:[%s1837_s11 + $0x28] sm:$0xff] %vm1396_vm1, %v1879_v46  ;;  %1688 = vrcp.f32 %v781_v48 }
  0x1c   : > { %1625 = vmatmul.mubr.msk.f32.gmra.mxu0 %vm324_vm0, %v298_v27  ;;  %v1893_v57 = vmin.f32 %v717_v47, 1.0  ;;  %v719_v58 = vmax.f32 %v655_v50, 0.0  ;;  %v783_v59 = vadd.f32 1e-08, %v655_v50  ;;  %v656_v60 = vld [vmem:[%s1821_s8 + $0x50] sm:$0xff]  ;;  %v718_v62 = vmax.f32 %v654_v54, 0.0 }
  0x1d   : > { %1649 = vmatmul.mubr.msk.f32.gmra.mxu1 %vm324_vm0, %v314_v31  ;;  %1627 = vmatprep.mubr.msk.f32.mxu0 %vm324_vm0, %v299_v35  ;;  %v1899_v61 = vmin.f32 %v716_v52, 1.0  ;;  %1690 = vrcp.f32 %v780_v53  ;;  %v782_v63 = vadd.f32 1e-08, %v654_v54  ;;  %v659_v0 = vld [vmem:[%s1821_s8 + $0x68] sm:$0xff]  ;;  %v302_v1 = vld [vmem:[%s1801_s29 + $0x58] sm:$0xff]  ;;  %v721_v3 = vmax.f32 %v657_v55, 0.0 }
  0x1e   : > { %1651 = vmatprep.mubr.msk.f32.mxu1 %vm324_vm0, %v315_v36  ;;  %1404 = vst.msk [vmem:[%s1837_s11 + $0x38] sm:$0xff] %vm1396_vm1, %v1893_v57  ;;  %v1908_v2 = vmin.f32 %v719_v58, 1.0  ;;  %v785_v4 = vadd.f32 1e-08, %v657_v55  ;;  %v318_v5 = vld [vmem:[%s1801_s29 + $0xd8] sm:$0xff]  ;;  %1692 = vrcp.f32 %v783_v59  ;;  %v1916_v6 = vmin.f32 %v718_v62, 1.0 }
  0x1f   : > { %1403 = vst.msk [vmem:[%s1837_s11 + $0x30] sm:$0xff] %vm1396_vm1, %v1899_v61  ;;  %v720_v7 = vmax.f32 %v656_v60, 0.0  ;;  %v784_v8 = vadd.f32 1e-08, %v656_v60  ;;  %v658_v9 = vld [vmem:[%s1821_s8 + $0x60] sm:$0xff]  ;;  %1694 = vrcp.f32 %v782_v63  ;;  %v1924_v12 = vmin.f32 %v721_v3, 1.0 }
  0x20   : > { %1628 = vmatmul.mubr.msk.f32.gmra.mxu0 %vm324_vm0, %v300_v40  ;;  %v303_v10 = vld [vmem:[%s1801_s29 + $0x60] sm:$0xff]  ;;  %1406 = vst.msk [vmem:[%s1837_s11 + $0x48] sm:$0xff] %vm1396_vm1, %v1908_v2  ;;  %v723_v13 = vmax.f32 %v659_v0, 0.0  ;;  %v787_v14 = vadd.f32 1e-08, %v659_v0  ;;  %1405 = vst.msk [vmem:[%s1837_s11 + $0x40] sm:$0xff] %vm1396_vm1, %v1916_v6  ;;  %v1677_v18 = vpop.eup %1676  ;;  %1696 = vrcp.f32 %v785_v4 }
  0x21   : > { %1652 = vmatmul.mubr.msk.f32.gmra.mxu1 %vm324_vm0, %v316_v41  ;;  %1630 = vmatprep.mubr.msk.f32.mxu0 %vm324_vm0, %v301_v45  ;;  %v319_v11 = vld [vmem:[%s1801_s29 + $0xe0] sm:$0xff]  ;;  %v1929_v15 = vmin.f32 %v720_v7, 1.0  ;;  %v722_v16 = vmax.f32 %v658_v9, 0.0  ;;  %v661_v17 = vld [vmem:[%s1821_s8 + $0x78] sm:$0xff]  ;;  %1408 = vst.msk [vmem:[%s1837_s11 + $0x58] sm:$0xff] %vm1396_vm1, %v1924_v12  ;;  %v660_v22 = vld [vmem:[%s1821_s8 + $0x70] sm:$0xff]  ;;  %1698 = vrcp.f32 %v784_v8 }
  0x22   : > { %1654 = vmatprep.mubr.msk.f32.mxu1 %vm324_vm0, %v317_v56  ;;  %v1937_v19 = vmin.f32 %v723_v13, 1.0  ;;  %v786_v20 = vadd.f32 1e-08, %v658_v9  ;;  %v725_v21 = vmax.f32 %v661_v17, 0.0  ;;  %v1679_v24 = vpop.eup %1678  ;;  %v811_v25 = vmul.f32 8.0, %v1677_v18  ;;  %v304_v26 = vld [vmem:[%s1801_s29 + $0x68] sm:$0xff] }
  0x23   : > { %v320_v27 = vld [vmem:[%s1801_s29 + $0xe8] sm:$0xff]  ;;  %1407 = vst.msk [vmem:[%s1837_s11 + $0x50] sm:$0xff] %vm1396_vm1, %v1929_v15  ;;  %v1947_v29 = vmin.f32 %v722_v16, 1.0  ;;  %v724_v30 = vmax.f32 %v660_v22, 0.0  ;;  %v1681_v31 = vpop.eup %1680  ;;  %v807_v33 = vmul.f32 8.0, %v1679_v24  ;;  %v305_v34 = vld [vmem:[%s1801_s29 + $0x70] sm:$0xff]  ;;  %1700 = vrcp.f32 %v787_v14 }
  0x24   : > { %1631 = vmatmul.mubr.msk.f32.gmra.mxu0 %vm324_vm0, %v302_v1  ;;  %1410 = vst.msk [vmem:[%s1837_s11 + $0x68] sm:$0xff] %vm1396_vm1, %v1937_v19  ;;  %v1953_v35 = vmin.f32 %v725_v21, 1.0  ;;  %v663_v36 = vld [vmem:[%s1821_s8 + $0x88] sm:$0xff]  ;;  %v1683_v38 = vpop.eup %1682  ;;  %v872_v39 = vmul.f32 %v811_v25, %v1842_v23  ;;  %v813_v40 = vmul.f32 8.0, %v1681_v31  ;;  %v321_v41 = vld [vmem:[%s1801_s29 + $0xf0] sm:$0xff]  ;;  %v306_v47 = vld [vmem:[%s1801_s29 + $0x78] sm:$0xff]  ;;  %1702 = vrcp.f32 %v786_v20 }
  0x25   : > { %1655 = vmatmul.mubr.msk.f32.gmra.mxu1 %vm324_vm0, %v318_v5  ;;  %1633 = vmatprep.mubr.msk.f32.mxu0 %vm324_vm0, %v303_v10  ;;  %1409 = vst.msk [vmem:[%s1837_s11 + $0x60] sm:$0xff] %vm1396_vm1, %v1947_v29  ;;  %v1961_v42 = vmin.f32 %v724_v30, 1.0  ;;  %v727_v43 = vmax.f32 %v663_v36, 0.0  ;;  %v870_v44 = vmul.f32 %v807_v33, %v1848_v28  ;;  %v809_v45 = vmul.f32 8.0, %v1683_v38  ;;  %v662_v49 = vld [vmem:[%s1821_s8 + $0x80] sm:$0xff]  ;;  %v322_v53 = vld [vmem:[%s1801_s29 + $0xf8] sm:$0xff] }
  0x26   : > { %1657 = vmatprep.mubr.msk.f32.mxu1 %vm324_vm0, %v319_v11  ;;  %v789_v48 = vadd.f32 1e-08, %v661_v17  ;;  %1412 = vst.msk [vmem:[%s1837_s11 + $0x78] sm:$0xff] %vm1396_vm1, %v1953_v35  ;;  %v1685_v50 = vpop.eup %1684  ;;  %914 = vperm.xlu1 %1675, %v872_v39   ;;  %v873_v52 = vmul.f32 %v813_v40, %v1856_v32  ;;  %v788_v54 = vadd.f32 1e-08, %v660_v22  ;;  %v726_v56 = vmax.f32 %v662_v49, 0.0 }
  0x27   : > { %1411 = vst.msk [vmem:[%s1837_s11 + $0x70] sm:$0xff] %vm1396_vm1, %v1961_v42  ;;  %v1977_v55 = vmin.f32 %v727_v43, 1.0  ;;  %v665_v58 = vld [vmem:[%s1821_s8 + $0x98] sm:$0xff]  ;;  %v1687_v59 = vpop.eup %1686  ;;  %904 = vperm.xlu0 %1674, %v870_v44   ;;  %v871_v60 = vmul.f32 %v809_v45, %v1865_v37  ;;  %v817_v62 = vmul.f32 8.0, %v1685_v50  ;;  %v664_v4 = vld [vmem:[%s1821_s8 + $0x90] sm:$0xff]  ;;  %v667_v14 = vld [vmem:[%s1821_s8 + $0xa8] sm:$0xff] }
  0x28   : > { %1634 = vmatmul.mubr.msk.f32.gmra.mxu0 %vm324_vm0, %v304_v26  ;;  %v729_v63 = vmax.f32 %v665_v58, 0.0  ;;  %v1689_v0 = vpop.eup %1688  ;;  %v815_v1 = vmul.f32 8.0, %v1687_v59  ;;  %v1985_v3 = vmin.f32 %v726_v56, 1.0  ;;  %1704 = vrcp.f32 %v789_v48  ;;  %v666_v24 = vld [vmem:[%s1821_s8 + $0xa0] sm:$0xff]  ;;  %v668_v45 = vld [vmem:[%s1821_s8 + $0xb0] sm:$0xff]  ;;  %v671_v50 = vld [vmem:[%s1821_s8 + $0xc8] sm:$0xff] }
  0x29   : > { %1658 = vmatmul.mubr.msk.f32.gmra.mxu1 %vm324_vm0, %v320_v27  ;;  %1636 = vmatprep.mubr.msk.f32.mxu0 %vm324_vm0, %v305_v34  ;;  %1414 = vst.msk [vmem:[%s1837_s11 + $0x88] sm:$0xff] %vm1396_vm1, %v1977_v55  ;;  %v791_v7 = vadd.f32 1e-08, %v663_v36  ;;  %v728_v9 = vmax.f32 %v664_v4, 0.0  ;;  %v875_v10 = vmul.f32 %v817_v62, %v1879_v46  ;;  %v821_v11 = vmul.f32 8.0, %v1689_v0  ;;  %v669_v36 = vld [vmem:[%s1821_s8 + $0xb8] sm:$0xff] }
  0x2a   : > { %1660 = vmatprep.mubr.msk.f32.mxu1 %vm324_vm0, %v321_v41  ;;  %v1691_v5 = vpop.eup %1690  ;;  %v1990_v8 = vmin.f32 %v729_v63, 1.0  ;;  %919 = vperm.xlu1 %1675, %v873_v52   ;;  %1706 = vrcp.f32 %v788_v54  ;;  %v790_v13 = vadd.f32 1e-08, %v662_v49  ;;  %1413 = vst.msk [vmem:[%s1837_s11 + $0x80] sm:$0xff] %vm1396_vm1, %v1985_v3  ;;  %v874_v17 = vmul.f32 %v815_v1, %v1885_v51  ;;  %v670_v63 = vld [vmem:[%s1821_s8 + $0xc0] sm:$0xff] }
  0x2b   : > { %v1693_v16 = vpop.eup %1692  ;;  %909 = vperm.xlu0 %1674, %v871_v60   ;;  %v819_v18 = vmul.f32 8.0, %v1691_v5  ;;  %v2001_v20 = vmin.f32 %v728_v9, 1.0  ;;  %v731_v21 = vmax.f32 %v667_v14, 0.0  ;;  %1708 = vrcp.f32 %v791_v7  ;;  %v673_v5 = vld [vmem:[%s1821_s8 + $0xd8] sm:$0xff] }
  0x2c   : > { %1637 = vmatmul.mubr.msk.f32.gmra.mxu0 %vm324_vm0, %v306_v47  ;;  %1416 = vst.msk [vmem:[%s1837_s11 + $0x98] sm:$0xff] %vm1396_vm1, %v1990_v8  ;;  %v1695_v22 = vpop.eup %1694  ;;  %v793_v25 = vadd.f32 1e-08, %v665_v58  ;;  %v730_v27 = vmax.f32 %v666_v24, 0.0  ;;  %v877_v31 = vmul.f32 %v821_v11, %v1893_v57  ;;  %v825_v33 = vmul.f32 8.0, %v1693_v16 }
  0x2d   : > { %1661 = vmatmul.mubr.msk.f32.gmra.mxu1 %vm324_vm0, %v322_v53  ;;  %1415 = vst.msk [vmem:[%s1837_s11 + $0x90] sm:$0xff] %vm1396_vm1, %v2001_v20  ;;  %v2007_v26 = vmin.f32 %v731_v21, 1.0  ;;  %v1697_v30 = vpop.eup %1696  ;;  %1710 = vrcp.f32 %v790_v13  ;;  %v792_v34 = vadd.f32 1e-08, %v664_v4  ;;  %v876_v39 = vmul.f32 %v819_v18, %v1899_v61 }
  0x2e   : > { %929 = vperm.xlu1 %1675, %v875_v10   ;;  %v1699_v38 = vpop.eup %1698  ;;  %v823_v40 = vmul.f32 8.0, %v1695_v22  ;;  %v2015_v41 = vmin.f32 %v730_v27, 1.0  ;;  %v733_v43 = vmax.f32 %v669_v36, 0.0  ;;  %1712 = vrcp.f32 %v793_v25  ;;  %v675_v25 = vld [vmem:[%s1821_s8 + $0xe8] sm:$0xff] }
  0x2f   : > { %924 = vperm.xlu0 %1674, %v874_v17   ;;  %1418 = vst.msk [vmem:[%s1837_s11 + $0xa8] sm:$0xff] %vm1396_vm1, %v2007_v26  ;;  %v795_v47 = vadd.f32 1e-08, %v667_v14  ;;  %v732_v49 = vmax.f32 %v668_v45, 0.0  ;;  %v879_v53 = vmul.f32 %v825_v33, %v1908_v2  ;;  %v829_v54 = vmul.f32 8.0, %v1697_v30  ;;  %v672_v17 = vld [vmem:[%s1821_s8 + $0xd0] sm:$0xff] }
  0x30   : > { %v1701_v44 = vpop.eup %1700  ;;  %1417 = vst.msk [vmem:[%s1837_s11 + $0xa0] sm:$0xff] %vm1396_vm1, %v2015_v41  ;;  %v2021_v48 = vmin.f32 %v733_v43, 1.0  ;;  %v827_v56 = vmul.f32 8.0, %v1699_v38  ;;  %v735_v58 = vmax.f32 %v671_v50, 0.0  ;;  %v878_v59 = vmul.f32 %v823_v40, %v1916_v6 }
  0x31   : > { %v1703_v52 = vpop.eup %1702  ;;  %1714 = vrcp.f32 %v792_v34  ;;  %v794_v60 = vadd.f32 1e-08, %v666_v24  ;;  %v2029_v62 = vmin.f32 %v732_v49, 1.0  ;;  %v833_v0 = vmul.f32 8.0, %v1701_v44 }
  0x32   : > { %939 = vperm.xlu1 %1675, %v877_v31   ;;  %1420 = vst.msk [vmem:[%s1837_s11 + $0xb8] sm:$0xff] %vm1396_vm1, %v2021_v48  ;;  %v2032_v1 = vmin.f32 %v735_v58, 1.0  ;;  %v734_v4 = vmax.f32 %v670_v63, 0.0  ;;  %v831_v7 = vmul.f32 8.0, %v1703_v52  ;;  %1716 = vrcp.f32 %v795_v47  ;;  %v674_v31 = vld [vmem:[%s1821_s8 + $0xe0] sm:$0xff] }
  0x33   : > { %934 = vperm.xlu0 %1674, %v876_v39   ;;  %1419 = vst.msk [vmem:[%s1837_s11 + $0xb0] sm:$0xff] %vm1396_vm1, %v2029_v62  ;;  %v737_v9 = vmax.f32 %v673_v5, 0.0  ;;  %v881_v11 = vmul.f32 %v829_v54, %v1924_v12  ;;  %v880_v13 = vmul.f32 %v827_v56, %v1929_v15  ;;  %v797_v14 = vadd.f32 1e-08, %v669_v36  ;;  %v676_v54 = vld [vmem:[%s1821_s8 + $0xf0] sm:$0xff] }
  0x34   : > { %1422 = vst.msk [vmem:[%s1837_s11 + $0xc8] sm:$0xff] %vm1396_vm1, %v2032_v1  ;;  %v2043_v16 = vmin.f32 %v734_v4, 1.0  ;;  %1718 = vrcp.f32 %v794_v60  ;;  %v796_v21 = vadd.f32 1e-08, %v668_v45  ;;  %v736_v24 = vmax.f32 %v672_v17, 0.0  ;;  %v677_v45 = vld [vmem:[%s1821_s8 + $0xf8] sm:$0xff] }
  0x35   : > { %v1705_v10 = vpop.eup %1704  ;;  %v2046_v22 = vmin.f32 %v737_v9, 1.0  ;;  %v883_v27 = vmul.f32 %v833_v0, %v1937_v19  ;;  %v739_v30 = vmax.f32 %v675_v25, 0.0  ;;  %v882_v33 = vmul.f32 %v831_v7, %v1947_v29 }
  0x36   : > { %949 = vperm.xlu1 %1675, %v879_v53   ;;  %1421 = vst.msk [vmem:[%s1837_s11 + $0xc0] sm:$0xff] %vm1396_vm1, %v2043_v16  ;;  %v837_v34 = vmul.f32 8.0, %v1705_v10  ;;  %v2058_v36 = vmin.f32 %v736_v24, 1.0  ;;  %v738_v38 = vmax.f32 %v674_v31, 0.0  ;;  %1720 = vrcp.f32 %v797_v14 }
  0x37   : > { %v1707_v18 = vpop.eup %1706  ;;  %944 = vperm.xlu0 %1674, %v878_v59   ;;  %1424 = vst.msk [vmem:[%s1837_s11 + $0xd8] sm:$0xff] %vm1396_vm1, %v2046_v22  ;;  %v799_v43 = vadd.f32 1e-08, %v671_v50  ;;  %v2060_v44 = vmin.f32 %v739_v30, 1.0  ;;  %1722 = vrcp.f32 %v796_v21  ;;  %v798_v49 = vadd.f32 1e-08, %v670_v63 }
  0x38   : > { %v1709_v39 = vpop.eup %1708  ;;  %v835_v40 = vmul.f32 8.0, %v1707_v18  ;;  %1423 = vst.msk [vmem:[%s1837_s11 + $0xd0] sm:$0xff] %vm1396_vm1, %v2058_v36  ;;  %v2066_v52 = vmin.f32 %v738_v38, 1.0  ;;  %v741_v53 = vmax.f32 %v677_v45, 0.0  ;;  %v740_v56 = vmax.f32 %v676_v54, 0.0 }
  0x39   : > { %1426 = vst.msk [vmem:[%s1837_s11 + $0xe8] sm:$0xff] %vm1396_vm1, %v2060_v44  ;;  %v885_v50 = vmul.f32 %v837_v34, %v1953_v35  ;;  %v841_v60 = vmul.f32 8.0, %v1709_v39  ;;  %1724 = vrcp.f32 %v799_v43  ;;  %v801_v63 = vadd.f32 1e-08, %v673_v5 }
  0x3a   : > { %959 = vperm.xlu1 %1675, %v881_v11   ;;  %v1711_v47 = vpop.eup %1710  ;;  %1425 = vst.msk [vmem:[%s1837_s11 + $0xe0] sm:$0xff] %vm1396_vm1, %v2066_v52  ;;  %v2076_v58 = vmin.f32 %v741_v53, 1.0  ;;  %v2078_v0 = vmin.f32 %v740_v56, 1.0  ;;  %v884_v4 = vmul.f32 %v835_v40, %v1961_v42  ;;  %1726 = vrcp.f32 %v798_v49 }
  0x3b   : > { %954 = vperm.xlu0 %1674, %v880_v13   ;;  %v1713_v59 = vpop.eup %1712  ;;  %v839_v7 = vmul.f32 8.0, %v1711_v47  ;;  %v800_v9 = vadd.f32 1e-08, %v672_v17  ;;  %v887_v13 = vmul.f32 %v841_v60, %v1977_v55  ;;  %1728 = vrcp.f32 %v801_v63 }
  0x3c   : > { %1428 = vst.msk [vmem:[%s1837_s11 + $0xf8] sm:$0xff] %vm1396_vm1, %v2076_v58  ;;  %1427 = vst.msk [vmem:[%s1837_s11 + $0xf0] sm:$0xff] %vm1396_vm1, %v2078_v0  ;;  %v845_v5 = vmul.f32 8.0, %v1713_v59  ;;  %v803_v14 = vadd.f32 1e-08, %v675_v25 }
  0x3d   : > { %v886_v18 = vmul.f32 %v839_v7, %v1985_v3  ;;  %1730 = vrcp.f32 %v800_v9  ;;  %v802_v17 = vadd.f32 1e-08, %v674_v31  ;;  %v804_v25 = vadd.f32 1e-08, %v676_v54 }
  0x3e   : > { %969 = vperm.xlu1 %1675, %v883_v27   ;;  %v1715_v10 = vpop.eup %1714  ;;  %v889_v27 = vmul.f32 %v845_v5, %v1990_v8  ;;  %1732 = vrcp.f32 %v803_v14 }
  0x3f   : > { %964 = vperm.xlu0 %1674, %v882_v33   ;;  %v1717_v11 = vpop.eup %1716  ;;  %v843_v21 = vmul.f32 8.0, %v1715_v10  ;;  %v805_v33 = vadd.f32 1e-08, %v677_v45  ;;  %1734 = vrcp.f32 %v802_v17 }
  0x40   : > { %v849_v30 = vmul.f32 8.0, %v1717_v11 }
  0x41   : > { %v1719_v24 = vpop.eup %1718  ;;  %v888_v38 = vmul.f32 %v843_v21, %v2001_v20  ;;  %1736 = vrcp.f32 %v805_v33 }
  0x42   : > { %979 = vperm.xlu1 %1675, %v885_v50   ;;  %v847_v39 = vmul.f32 8.0, %v1719_v24  ;;  %v891_v43 = vmul.f32 %v849_v30, %v2007_v26  ;;  %1738 = vrcp.f32 %v804_v25 }
  0x43   : > { %974 = vperm.xlu0 %1674, %v884_v4   ;;  %v1721_v34 = vpop.eup %1720 }
  0x44   : > { %v1723_v40 = vpop.eup %1722  ;;  %v853_v47 = vmul.f32 8.0, %v1721_v34  ;;  %v890_v49 = vmul.f32 %v847_v39, %v2015_v41 }
  0x45   : > { %v851_v53 = vmul.f32 8.0, %v1723_v40 }
  0x46   : > { %989 = vperm.xlu1 %1675, %v887_v13   ;;  %v1725_v31 = vpop.eup %1724  ;;  %v893_v56 = vmul.f32 %v853_v47, %v2021_v48 }
  0x47   : > { %984 = vperm.xlu0 %1674, %v886_v18   ;;  %v1727_v45 = vpop.eup %1726  ;;  %v857_v50 = vmul.f32 8.0, %v1725_v31  ;;  %v892_v54 = vmul.f32 %v851_v53, %v2029_v62 }
  0x48   : > { %v1729_v59 = vpop.eup %1728  ;;  %v855_v60 = vmul.f32 8.0, %v1727_v45 }
  0x49   : > { %v895_v4 = vmul.f32 %v857_v50, %v2032_v1  ;;  %v861_v7 = vmul.f32 8.0, %v1729_v59 }
  0x4a   : > { %999 = vperm.xlu1 %1675, %v889_v27   ;;  %v1731_v63 = vpop.eup %1730  ;;  %v894_v10 = vmul.f32 %v855_v60, %v2043_v16 }
  0x4b   : > { %994 = vperm.xlu0 %1674, %v888_v38   ;;  %v1733_v9 = vpop.eup %1732  ;;  %v859_v11 = vmul.f32 8.0, %v1731_v63  ;;  %v897_v5 = vmul.f32 %v861_v7, %v2046_v22 }
  0x4c   : > { %v1735_v13 = vpop.eup %1734  ;;  %v865_v14 = vmul.f32 8.0, %v1733_v9 }
  0x4d   : > { %v896_v21 = vmul.f32 %v859_v11, %v2058_v36  ;;  %v863_v17 = vmul.f32 8.0, %v1735_v13  ;;  %v2202_v13 = vld [vmem:[%s2388_s4] ss:$0 sm:$0xff] }
  0x4e   : > { %1009 = vperm.xlu1 %1675, %v891_v43   ;;  %v1737_v18 = vpop.eup %1736  ;;  %v899_v27 = vmul.f32 %v865_v14, %v2060_v44 }
  0x4f   : > { %1004 = vperm.xlu0 %1674, %v890_v49   ;;  %v1739_v24 = vpop.eup %1738  ;;  %v869_v30 = vmul.f32 8.0, %v1737_v18  ;;  %v898_v33 = vmul.f32 %v863_v17, %v2066_v52 }
  0x50   : > { %v867_v34 = vmul.f32 8.0, %v1739_v24 }
  0x51   : > { %v901_v38 = vmul.f32 %v869_v30, %v2076_v58 }
  0x52   : > { %1019 = vperm.xlu1 %1675, %v893_v56   ;;  %v900_v39 = vmul.f32 %v867_v34, %v2078_v0 }
  0x53   : > { %1014 = vperm.xlu0 %1674, %v892_v54   ;;  %v2192_v54 = vld [vmem:[%s2387_s3] ss:$0 sm:$0xff] }
  0x56   : > { %1029 = vperm.xlu1 %1675, %v895_v4  }
  0x57   : > { %1024 = vperm.xlu0 %1674, %v894_v10  }
  0x5a   : > { %1039 = vperm.xlu1 %1675, %v897_v5  }
  0x5b   : > { %1034 = vperm.xlu0 %1674, %v896_v21  }
  0x5e   : > { %1049 = vperm.xlu1 %1675, %v899_v27  }
  0x5f   : > { %1044 = vperm.xlu0 %1674, %v898_v33  }
  0x62   : > { %1059 = vperm.xlu1 %1675, %v901_v38  }
  0x63   : > { %1054 = vperm.xlu0 %1674, %v900_v39  }
  0x66   : > { %1140 = vperm.xlu1 %1675, %v1865_v37  }
  0x67   : > { %1135 = vperm.xlu0 %1674, %v1848_v28  }
  0x6a   : > { %1150 = vperm.xlu1 %1675, %v1856_v32  }
  0x6b   : > { %1145 = vperm.xlu0 %1674, %v1842_v23  }
  0x6e   : > { %1160 = vperm.xlu1 %1675, %v1879_v46  }
  0x6f   : > { %1155 = vperm.xlu0 %1674, %v1885_v51  }
  0x72   : > { %1170 = vperm.xlu1 %1675, %v1893_v57  }
  0x73   : > { %1165 = vperm.xlu0 %1674, %v1899_v61  }
  0x76   : > { %1180 = vperm.xlu1 %1675, %v1908_v2  }
  0x77   : > { %1175 = vperm.xlu0 %1674, %v1916_v6  }
  0x7a   : > { %1190 = vperm.xlu1 %1675, %v1924_v12  }
  0x7b   : > { %1185 = vperm.xlu0 %1674, %v1929_v15  }
  0x7e   : > { %1200 = vperm.xlu1 %1675, %v1937_v19  }
  0x7f   : > { %1195 = vperm.xlu0 %1674, %v1947_v29  }
  0x82   : > { %1210 = vperm.xlu1 %1675, %v1953_v35  }
  0x83   : > { %1205 = vperm.xlu0 %1674, %v1961_v42  }
  0x86   : > { %1220 = vperm.xlu1 %1675, %v1977_v55  }
  0x87   : > { %1215 = vperm.xlu0 %1674, %v1985_v3  }
  0x8a   : > { %1230 = vperm.xlu1 %1675, %v1990_v8  }
  0x8b   : > { %1225 = vperm.xlu0 %1674, %v2001_v20  }
  0x8e   : > { %1240 = vperm.xlu1 %1675, %v2007_v26  }
  0x8f   : > { %1235 = vperm.xlu0 %1674, %v2015_v41  }
  0x92   : > { %1250 = vperm.xlu1 %1675, %v2021_v48  }
  0x93   : > { %1245 = vperm.xlu0 %1674, %v2029_v62  }
  0x96   : > { %1260 = vperm.xlu1 %1675, %v2032_v1  }
  0x97   : > { %1255 = vperm.xlu0 %1674, %v2043_v16  }
  0x9a   : > { %1270 = vperm.xlu1 %1675, %v2046_v22  }
  0x9b   : > { %1265 = vperm.xlu0 %1674, %v2058_v36  }
  0x9e   : > { %1280 = vperm.xlu1 %1675, %v2060_v44  }
  0x9f   : > { %1275 = vperm.xlu0 %1674, %v2066_v52  }
  0xa1   : > { %v915_v23 = vpop.permute.xlu1 %914 }
  0xa2   : > { %v905_v28 = vpop.permute.xlu0 %904  ;;  %1290 = vperm.xlu1 %1675, %v2076_v58  }
  0xa3   : > { %1285 = vperm.xlu0 %1674, %v2078_v0  }
  0xa5   : > { %v920_v32 = vpop.permute.xlu1 %919 }
  0xa6   : > { %v910_v37 = vpop.permute.xlu0 %909 }
  0xa9   : > { %v930_v46 = vpop.permute.xlu1 %929 }
  0xaa   : > { %v925_v51 = vpop.permute.xlu0 %924 }
  0xad   : > { %v2135_v57 = vpop.permute.xlu1 %939 }
  0xae   : > { %v2137_v61 = vpop.permute.xlu0 %934 }
  0xb1   : > { %v2139_v2 = vpop.permute.xlu1 %949 }
  0xb2   : > { %v2141_v6 = vpop.permute.xlu0 %944 }
  0xb5   : > { %v2143_v12 = vpop.permute.xlu1 %959 }
  0xb6   : > { %v2145_v15 = vpop.permute.xlu0 %954 }
  0xb9   : > { %v2147_v19 = vpop.permute.xlu1 %969 }
  0xba   : > { %v2149_v29 = vpop.permute.xlu0 %964 }
  0xbd   : > { %v2151_v35 = vpop.permute.xlu1 %979 }
  0xbe   : > { %v2153_v42 = vpop.permute.xlu0 %974 }
  0xc1   : > { %v2155_v55 = vpop.permute.xlu1 %989 }
  0xc2   : > { %v2157_v3 = vpop.permute.xlu0 %984 }
  0xc5   : > { %v2159_v8 = vpop.permute.xlu1 %999 }
  0xc6   : > { %v2161_v20 = vpop.permute.xlu0 %994 }
  0xc9   : > { %v2163_v26 = vpop.permute.xlu1 %1009 }
  0xca   : > { %v2165_v41 = vpop.permute.xlu0 %1004 }
  0xcd   : > { %v2167_v48 = vpop.permute.xlu1 %1019 }
  0xce   : > { %v2169_v1 = vpop.permute.xlu0 %1014 }
  0xd0   : > { %v1617_v62 = vpop.f32.mrf.mxu0 }
  0xd1   : > { %v2171_v22 = vpop.permute.xlu1 %1029  ;;  %v2179_v43 = vpop.f32.mrf.mxu1  ;;  %v1063_v45 = vmul.f32 %v1617_v62, %v910_v37 }
  0xd2   : > { %v487_v16 = vpop.f32.mrf.mxu0  ;;  %v2173_v44 = vpop.permute.xlu0 %1024 }
  0xd3   : > { %v2185_v56 = vpop.f32.mrf.mxu1  ;;  %v1062_v50 = vmul.f32 %v905_v28, %v487_v16  ;;  %v1102_v9 = vadd.f32 %v2192_v54, %v1063_v45 }
  0xd4   : > { %v1620_v36 = vpop.f32.mrf.mxu0 }
  0xd5   : > { %v2175_v58 = vpop.permute.xlu1 %1039  ;;  %v1065_v7 = vmul.f32 %v1620_v36, %v920_v32  ;;  %v2197_v10 = vpop.f32.mrf.mxu1  ;;  %v1101_v14 = vadd.f32 %v2192_v54, %v1062_v50 }
  0xd6   : > { %v497_v52 = vpop.f32.mrf.mxu0  ;;  %v2177_v25 = vpop.permute.xlu0 %1034 }
  0xd7   : > { %v1064_v11 = vmul.f32 %v915_v23, %v497_v52  ;;  %v1104_v33 = vadd.f32 %v2192_v54, %v1065_v7  ;;  %v2213_v34 = vpop.f32.mrf.mxu1 }
  0xd8   : > { %v1623_v0 = vpop.f32.mrf.mxu0 }
  0xd9   : > { %v2181_v47 = vpop.permute.xlu1 %1049  ;;  %v1067_v27 = vmul.f32 %v1623_v0, %v930_v46  ;;  %v1103_v28 = vadd.f32 %v2192_v54, %v1064_v11  ;;  %v2224_v52 = vpop.f32.mrf.mxu1 }
  0xda   : > { %v507_v40 = vpop.f32.mrf.mxu0  ;;  %v2183_v49 = vpop.permute.xlu0 %1044 }
  0xdb   : > { %v1066_v38 = vmul.f32 %v925_v51, %v507_v40  ;;  %v1106_v51 = vadd.f32 %v2192_v54, %v1067_v27 }
  0xdc   : > { %v1626_v31 = vpop.f32.mrf.mxu0 }
  0xdd   : > { %v2187_v59 = vpop.permute.xlu1 %1059  ;;  %v1069_v16 = vmul.f32 %v1626_v31, %v2135_v57  ;;  %v1105_v50 = vadd.f32 %v2192_v54, %v1066_v38 }
  0xde   : > { %v517_v53 = vpop.f32.mrf.mxu0  ;;  %v2194_v63 = vpop.permute.xlu0 %1054 }
  0xdf   : > { %v1068_v0 = vmul.f32 %v2137_v61, %v517_v53  ;;  %v1108_v61 = vadd.f32 %v2192_v54, %v1069_v16  ;;  %v2236_v53 = vpop.f32.mrf.mxu1 }
  0xe0   : > { %v1629_v60 = vpop.f32.mrf.mxu0 }
  0xe1   : > { %v1141_v5 = vpop.permute.xlu1 %1140  ;;  %v1071_v11 = vmul.f32 %v1629_v60, %v2139_v2 }
  0xe2   : > { %v527_v4 = vpop.f32.mrf.mxu0  ;;  %v1294_v18 = vmul.f32 %v1141_v5, %v1102_v9  ;;  %v1136_v21 = vpop.permute.xlu0 %1135 }
  0xe3   : > { %v1293_v24 = vmul.f32 %v1136_v21, %v1101_v14  ;;  %v1070_v14 = vmul.f32 %v2141_v6, %v527_v4  ;;  %v1110_v6 = vadd.f32 %v2192_v54, %v1071_v11  ;;  %v2248_v4 = vpop.f32.mrf.mxu1 }
  0xe4   : > { %v1632_v17 = vpop.f32.mrf.mxu0  ;;  %v1333_v30 = vadd.f32 %v2202_v13, %v1294_v18 }
  0xe5   : > { %v1332_v39 = vadd.f32 %v2202_v13, %v1293_v24  ;;  %v1151_v23 = vpop.permute.xlu1 %1150  ;;  %v1107_v24 = vadd.f32 %v2192_v54, %v1068_v0 }
  0xe6   : > { %1365 = vst.msk [vmem:[%s2209_s18 + $0x8] sm:$0xff] %vm324_vm0, %v1333_v30  ;;  %v1296_v32 = vmul.f32 %v1151_v23, %v1104_v33  ;;  %v1146_v37 = vpop.permute.xlu0 %1145  ;;  %v537_v62 = vpop.f32.mrf.mxu0  ;;  %v1073_v33 = vmul.f32 %v1632_v17, %v2143_v12 }
  0xe7   : > { %1364 = vst.msk [vmem:[%s2209_s18] sm:$0xff] %vm324_vm0, %v1332_v39  ;;  %v1295_v46 = vmul.f32 %v1146_v37, %v1103_v28  ;;  %v1072_v39 = vmul.f32 %v2145_v15, %v537_v62  ;;  %v2260_v62 = vpop.f32.mrf.mxu1 }
  0xe8   : > { %v1335_v36 = vadd.f32 %v2202_v13, %v1296_v32  ;;  %v1635_v57 = vpop.f32.mrf.mxu0  ;;  %v1109_v32 = vadd.f32 %v2192_v54, %v1070_v14  ;;  %v1112_v15 = vadd.f32 %v2192_v54, %v1073_v33 }
  0xe9   : > { %v1334_v40 = vadd.f32 %v2202_v13, %v1295_v46  ;;  %v1161_v45 = vpop.permute.xlu1 %1160  ;;  %v1075_v16 = vmul.f32 %v1635_v57, %v2147_v19 }
  0xea   : > { %1367 = vst.msk [vmem:[%s2209_s18 + $0x18] sm:$0xff] %vm324_vm0, %v1335_v36  ;;  %v1298_v7 = vmul.f32 %v1161_v45, %v1106_v51  ;;  %v1156_v9 = vpop.permute.xlu0 %1155  ;;  %v547_v2 = vpop.f32.mrf.mxu0  ;;  %v1111_v45 = vadd.f32 %v2192_v54, %v1072_v39 }
  0xeb   : > { %1366 = vst.msk [vmem:[%s2209_s18 + $0x10] sm:$0xff] %vm324_vm0, %v1334_v40  ;;  %v1297_v31 = vmul.f32 %v1156_v9, %v1105_v50  ;;  %v1074_v51 = vmul.f32 %v2149_v29, %v547_v2  ;;  %v1114_v29 = vadd.f32 %v2192_v54, %v1075_v16  ;;  %v1078_v2 = vmul.f32 %v2157_v3, %v2185_v56 }
  0xec   : > { %v1337_v5 = vadd.f32 %v2202_v13, %v1298_v7  ;;  %v1638_v37 = vpop.f32.mrf.mxu0 }
  0xed   : > { %v1336_v18 = vadd.f32 %v2202_v13, %v1297_v31  ;;  %v1171_v21 = vpop.permute.xlu1 %1170  ;;  %v1077_v57 = vmul.f32 %v1638_v37, %v2151_v35  ;;  %v1113_v14 = vadd.f32 %v2192_v54, %v1074_v51 }
  0xee   : > { %1369 = vst.msk [vmem:[%s2209_s18 + $0x28] sm:$0xff] %vm324_vm0, %v1337_v5  ;;  %v1300_v27 = vmul.f32 %v1171_v21, %v1108_v61  ;;  %v1166_v30 = vpop.permute.xlu0 %1165  ;;  %v557_v50 = vpop.f32.mrf.mxu0 }
  0xef   : > { %1368 = vst.msk [vmem:[%s2209_s18 + $0x20] sm:$0xff] %vm324_vm0, %v1336_v18  ;;  %v1299_v60 = vmul.f32 %v1166_v30, %v1107_v24  ;;  %v1076_v11 = vmul.f32 %v2153_v42, %v557_v50  ;;  %v1653_v18 = vpop.f32.mrf.mxu1  ;;  %v1116_v30 = vadd.f32 %v2192_v54, %v1077_v57 }
  0xf0   : > { %v1339_v38 = vadd.f32 %v2202_v13, %v1300_v27  ;;  %v1079_v27 = vmul.f32 %v2179_v43, %v2155_v55  ;;  %v1081_v43 = vmul.f32 %v2197_v10, %v2159_v8  ;;  %v1083_v10 = vmul.f32 %v2224_v52, %v2163_v26 }
  0xf1   : > { %v1338_v23 = vadd.f32 %v2202_v13, %v1299_v60  ;;  %v1181_v28 = vpop.permute.xlu1 %1180  ;;  %v1085_v52 = vmul.f32 %v2248_v4, %v2167_v48  ;;  %v1087_v4 = vmul.f32 %v1653_v18, %v2171_v22 }
  0xf2   : > { %1371 = vst.msk [vmem:[%s2209_s18 + $0x38] sm:$0xff] %vm324_vm0, %v1339_v38  ;;  %v1302_v46 = vmul.f32 %v1181_v28, %v1110_v6  ;;  %v1176_v12 = vpop.permute.xlu0 %1175  ;;  %v1115_v38 = vadd.f32 %v2192_v54, %v1076_v11  ;;  %v607_v6 = vpop.f32.mrf.mxu1  ;;  %v1118_v56 = vadd.f32 %v2192_v54, %v1079_v27  ;;  %v1080_v28 = vmul.f32 %v2161_v20, %v2213_v34 }
  0xf3   : > { %1370 = vst.msk [vmem:[%s2209_s18 + $0x30] sm:$0xff] %vm324_vm0, %v1338_v23  ;;  %v1301_v17 = vmul.f32 %v1176_v12, %v1109_v32  ;;  %v1120_v34 = vadd.f32 %v2192_v54, %v1081_v43 }
  0xf4   : > { %v1341_v36 = vadd.f32 %v2202_v13, %v1302_v46  ;;  %v1117_v46 = vadd.f32 %v2192_v54, %v1078_v2  ;;  %v1656_v12 = vpop.f32.mrf.mxu1 }
  0xf5   : > { %v1340_v0 = vadd.f32 %v2202_v13, %v1301_v17  ;;  %v1191_v40 = vpop.permute.xlu1 %1190  ;;  %v1089_v18 = vmul.f32 %v1656_v12, %v2175_v58 }
  0xf6   : > { %1373 = vst.msk [vmem:[%s2209_s18 + $0x48] sm:$0xff] %vm324_vm0, %v1341_v36  ;;  %v1304_v7 = vmul.f32 %v1191_v40, %v1112_v15  ;;  %v1186_v19 = vpop.permute.xlu0 %1185  ;;  %v1082_v36 = vmul.f32 %v2165_v41, %v2236_v53  ;;  %v617_v40 = vpop.f32.mrf.mxu1  ;;  %v1122_v53 = vadd.f32 %v2192_v54, %v1083_v10 }
  0xf7   : > { %1372 = vst.msk [vmem:[%s2209_s18 + $0x40] sm:$0xff] %vm324_vm0, %v1340_v0  ;;  %v1303_v9 = vmul.f32 %v1186_v19, %v1111_v45  ;;  %v1119_v0 = vadd.f32 %v2192_v54, %v1080_v28 }
  0xf8   : > { %v1343_v31 = vadd.f32 %v2202_v13, %v1304_v7  ;;  %v1084_v7 = vmul.f32 %v2169_v1, %v2260_v62  ;;  %v1121_v57 = vadd.f32 %v2192_v54, %v1082_v36  ;;  %v1124_v1 = vadd.f32 %v2192_v54, %v1085_v52 }
  0xf9   : > { %v1342_v5 = vadd.f32 %v2202_v13, %v1303_v9  ;;  %v1201_v61 = vpop.permute.xlu1 %1200  ;;  %v1086_v62 = vmul.f32 %v2173_v44, %v607_v6  ;;  %v1126_v44 = vadd.f32 %v2192_v54, %v1087_v4 }
  0xfa   : > { %1375 = vst.msk [vmem:[%s2209_s18 + $0x58] sm:$0xff] %vm324_vm0, %v1343_v31  ;;  %v1306_v21 = vmul.f32 %v1201_v61, %v1114_v29  ;;  %v1196_v24 = vpop.permute.xlu0 %1195  ;;  %v1659_v31 = vpop.f32.mrf.mxu1 }
  0xfb   : > { %1374 = vst.msk [vmem:[%s2209_s18 + $0x50] sm:$0xff] %vm324_vm0, %v1342_v5  ;;  %v1305_v35 = vmul.f32 %v1196_v24, %v1113_v14 }
  0xfc   : > { %v1345_v42 = vadd.f32 %v2202_v13, %v1306_v21  ;;  %v1123_v21 = vadd.f32 %v2192_v54, %v1084_v7  ;;  %v627_v24 = vpop.f32.mrf.mxu1 }
  0xfd   : > { %v1344_v60 = vadd.f32 %v2202_v13, %v1305_v35  ;;  %v1211_v33 = vpop.permute.xlu1 %1210  ;;  %v1090_v43 = vmul.f32 %v2183_v49, %v627_v24 }
  0xfe   : > { %1377 = vst.msk [vmem:[%s2209_s18 + $0x68] sm:$0xff] %vm324_vm0, %v1345_v42  ;;  %v1308_v39 = vmul.f32 %v1211_v33, %v1116_v30  ;;  %v1206_v23 = vpop.permute.xlu0 %1205  ;;  %v1088_v30 = vmul.f32 %v2177_v25, %v617_v40  ;;  %v1125_v33 = vadd.f32 %v2192_v54, %v1086_v62  ;;  %v1128_v25 = vadd.f32 %v2192_v54, %v1089_v18 }
  0xff   : > { %1376 = vst.msk [vmem:[%s2209_s18 + $0x60] sm:$0xff] %vm324_vm0, %v1344_v60  ;;  %v1307_v55 = vmul.f32 %v1206_v23, %v1115_v38  ;;  %v1662_v38 = vpop.f32.mrf.mxu1  ;;  %v1091_v23 = vmul.f32 %v1659_v31, %v2181_v47 }
 0x100   : > { %v1347_v3 = vadd.f32 %v2202_v13, %v1308_v39  ;;  %v1127_v28 = vadd.f32 %v2192_v54, %v1088_v30  ;;  %v1093_v12 = vmul.f32 %v1662_v38, %v2187_v59 }
 0x101   : > { %v1346_v32 = vadd.f32 %v2202_v13, %v1307_v55  ;;  %v1221_v37 = vpop.permute.xlu1 %1220  ;;  %v1130_v49 = vadd.f32 %v2192_v54, %v1091_v23 }
 0x102   : > { %1379 = vst.msk [vmem:[%s2209_s18 + $0x78] sm:$0xff] %vm324_vm0, %v1347_v3  ;;  %v1310_v17 = vmul.f32 %v1221_v37, %v1118_v56  ;;  %v1216_v16 = vpop.permute.xlu0 %1215 }
 0x103   : > { %1378 = vst.msk [vmem:[%s2209_s18 + $0x70] sm:$0xff] %vm324_vm0, %v1346_v32  ;;  %v1309_v8 = vmul.f32 %v1216_v16, %v1117_v46  ;;  %v637_v32 = vpop.f32.mrf.mxu1 }
 0x104   : > { %v1349_v20 = vadd.f32 %v2202_v13, %v1310_v17  ;;  %v1092_v16 = vmul.f32 %v2194_v63, %v637_v32 }
 0x105   : > { %v1348_v15 = vadd.f32 %v2202_v13, %v1309_v8  ;;  %v1231_v51 = vpop.permute.xlu1 %1230 }
 0x106   : > { %1381 = vst.msk [vmem:[%s2209_s18 + $0x88] sm:$0xff] %vm324_vm0, %v1349_v20  ;;  %v1312_v45 = vmul.f32 %v1231_v51, %v1120_v34  ;;  %v1226_v50 = vpop.permute.xlu0 %1225  ;;  %v1129_v20 = vadd.f32 %v2192_v54, %v1090_v43  ;;  %v1132_v51 = vadd.f32 %v2192_v54, %v1093_v12  ;;  %v1131_v40 = vadd.f32 %v2192_v54, %v1092_v16 }
 0x107   : > { %1380 = vst.msk [vmem:[%s2209_s18 + $0x80] sm:$0xff] %vm324_vm0, %v1348_v15  ;;  %v1311_v26 = vmul.f32 %v1226_v50, %v1119_v0 }
 0x108   : > { %v1351_v41 = vadd.f32 %v2202_v13, %v1312_v45 }
 0x109   : > { %v1350_v19 = vadd.f32 %v2202_v13, %v1311_v26  ;;  %v1241_v9 = vpop.permute.xlu1 %1240 }
 0x10a   : > { %1383 = vst.msk [vmem:[%s2209_s18 + $0x98] sm:$0xff] %vm324_vm0, %v1351_v41  ;;  %v1314_v29 = vmul.f32 %v1241_v9, %v1122_v53  ;;  %v1236_v11 = vpop.permute.xlu0 %1235 }
 0x10b   : > { %1382 = vst.msk [vmem:[%s2209_s18 + $0x90] sm:$0xff] %vm324_vm0, %v1350_v19  ;;  %v1313_v48 = vmul.f32 %v1236_v11, %v1121_v57 }
 0x10c   : > { %v1353_v5 = vadd.f32 %v2202_v13, %v1314_v29 }
 0x10d   : > { %v1352_v61 = vadd.f32 %v2202_v13, %v1313_v48  ;;  %v1251_v14 = vpop.permute.xlu1 %1250 }
 0x10e   : > { %1385 = vst.msk [vmem:[%s2209_s18 + $0xa8] sm:$0xff] %vm324_vm0, %v1353_v5  ;;  %v1316_v35 = vmul.f32 %v1251_v14, %v1124_v1  ;;  %v1246_v27 = vpop.permute.xlu0 %1245 }
 0x10f   : > { %1384 = vst.msk [vmem:[%s2209_s18 + $0xa0] sm:$0xff] %vm324_vm0, %v1352_v61  ;;  %v1315_v22 = vmul.f32 %v1246_v27, %v1123_v21 }
 0x110   : > { %v1355_v42 = vadd.f32 %v2202_v13, %v1316_v35 }
 0x111   : > { %v1354_v2 = vadd.f32 %v2202_v13, %v1315_v22  ;;  %v1261_v60 = vpop.permute.xlu1 %1260 }
 0x112   : > { %1387 = vst.msk [vmem:[%s2209_s18 + $0xb8] sm:$0xff] %vm324_vm0, %v1355_v42  ;;  %v1318_v6 = vmul.f32 %v1261_v60, %v1126_v44  ;;  %v1256_v39 = vpop.permute.xlu0 %1255 }
 0x113   : > { %1386 = vst.msk [vmem:[%s2209_s18 + $0xb0] sm:$0xff] %vm324_vm0, %v1354_v2  ;;  %v1317_v58 = vmul.f32 %v1256_v39, %v1125_v33 }
 0x114   : > { %v1357_v55 = vadd.f32 %v2202_v13, %v1318_v6 }
 0x115   : > { %v1356_v3 = vadd.f32 %v2202_v13, %v1317_v58  ;;  %v1271_v56 = vpop.permute.xlu1 %1270 }
 0x116   : > { %1389 = vst.msk [vmem:[%s2209_s18 + $0xc8] sm:$0xff] %vm324_vm0, %v1357_v55  ;;  %v1320_v37 = vmul.f32 %v1271_v56, %v1128_v25  ;;  %v1266_v46 = vpop.permute.xlu0 %1265 }
 0x117   : > { %1388 = vst.msk [vmem:[%s2209_s18 + $0xc0] sm:$0xff] %vm324_vm0, %v1356_v3  ;;  %v1319_v47 = vmul.f32 %v1266_v46, %v1127_v28 }
 0x118   : > { %v1359_v17 = vadd.f32 %v2202_v13, %v1320_v37 }
 0x119   : > { %v1358_v8 = vadd.f32 %v2202_v13, %v1319_v47  ;;  %v1281_v10 = vpop.permute.xlu1 %1280 }
 0x11a   : > { %1391 = vst.msk [vmem:[%s2209_s18 + $0xd8] sm:$0xff] %vm324_vm0, %v1359_v17  ;;  %v1322_v34 = vmul.f32 %v1281_v10, %v1130_v49  ;;  %v1276_v36 = vpop.permute.xlu0 %1275 }
 0x11b   : > { %1390 = vst.msk [vmem:[%s2209_s18 + $0xd0] sm:$0xff] %vm324_vm0, %v1358_v8  ;;  %v1321_v59 = vmul.f32 %v1276_v36, %v1129_v20 }
 0x11c   : > { %v1361_v15 = vadd.f32 %v2202_v13, %v1322_v34 }
 0x11d   : > { %v1360_v63 = vadd.f32 %v2202_v13, %v1321_v59  ;;  %v1291_v0 = vpop.permute.xlu1 %1290 }
 0x11e   : > { %1393 = vst.msk [vmem:[%s2209_s18 + $0xe8] sm:$0xff] %vm324_vm0, %v1361_v15  ;;  %v1324_v45 = vmul.f32 %v1291_v0, %v1132_v51  ;;  %v1286_v50 = vpop.permute.xlu0 %1285 }
 0x11f   : > { %1392 = vst.msk [vmem:[%s2209_s18 + $0xe0] sm:$0xff] %vm324_vm0, %v1360_v63  ;;  %v1323_v26 = vmul.f32 %v1286_v50, %v1131_v40 }
 0x120   : > { %v1363_v52 = vadd.f32 %v2202_v13, %v1324_v45 }
 0x121   : > { %v1362_v41 = vadd.f32 %v2202_v13, %v1323_v26 }
 0x122   : > { %1395 = vst.msk [vmem:[%s2209_s18 + $0xf8] sm:$0xff] %vm324_vm0, %v1363_v52 }
 0x123   : > { %1394 = vst.msk [vmem:[%s2209_s18 + $0xf0] sm:$0xff] %vm324_vm0, %v1362_v41 }
 0x124 PF: > { %s17_s21 = sadd.s32 1, %s1746_s21  }
 0x125   : > { %p14_p4 = scmp.ge.s32.totalorder %s17_s21, 4  }
 0x127   :  { %16 = sbr.rel (!%p14_p4) target bundleno = 1 (0x1), region = 85 }

</bundles_post_ra>
